<compile_context>
chip_gen: v5e
topology: v5e:2x2
jax: 0.10.0
libtpu: 0.0.40
codegen_flags: <defaults>
</compile_context>

<pallas_src>
import functools
import math

import jax
import jax.numpy as jnp
from jax import lax
from jax.experimental import pallas as pl
from jax.experimental.pallas import tpu as pltpu

_MASK_VALUE = -1e30  # large finite negative; exp(x - m) underflows to exactly 0


def _pick_tile(dim, candidates):
    """Largest candidate tile that divides `dim`, else the full dim (no partial blocks)."""
    for c in candidates:
        if dim >= c and dim % c == 0:
            return c
    return dim
# TODO(synk): ragged (non-divisible) S falls back to full-dim blocks; a cdiv grid
# with in-kernel tail masking would keep pipelining for prime-ish sequence lengths.


# --------------------- projection GEMM -> head-major output -------------------
def _proj_heads_kernel(x_ref, w_ref, b_ref, o_ref, acc_ref, *, head_dim):
    k = pl.program_id(3)

    @pl.when(k == 0)
    def _init():
        # bias folded into the accumulator init (no separate finalize add/copy)
        acc_ref[...] = jnp.broadcast_to(b_ref[...], acc_ref.shape)

    # x: (tm, tk), w: (tn, tk) torch layout (Out, In) -> contract In with In.
    acc_ref[...] += lax.dot_general(
        x_ref[...].astype(jnp.bfloat16), w_ref[...].astype(jnp.bfloat16),
        (((1,), (1,)), ((), ())), preferred_element_type=jnp.float32)

    @pl.when(k == pl.num_programs(3) - 1)
    def _store():
        acc = acc_ref[...]
        gh = o_ref.shape[0]                      # heads covered by this n-block
        for g in range(gh):                      # static unroll
            o_ref[g] = acc[:, g * head_dim:(g + 1) * head_dim].astype(o_ref.dtype)


def project_heads(x, w, b, head_dim):
    """x (B,S,E) @ w^T + b with w in torch layout (N, E); output head-major
    (N // head_dim, B, S, head_dim) in bf16 -> no HBM transpose afterwards."""
    B, S, E = x.shape
    N = w.shape[0]
    D = head_dim
    assert N % D == 0
    nh = N // D
    tm = _pick_tile(S, (256, 128))
    tk = _pick_tile(E, (512, 256, 128))
    # tn: multiple of D (so out blocks are whole heads), divides N, targets <=512.
    gh = 1
    for g in range(nh, 0, -1):
        if nh % g == 0 and g * D <= 512 and ((g * D) % 8 == 0 or g == nh):
            gh = g
            break
    tn = gh * D
    grid = (B, S // tm, N // tn, E // tk)
    return pl.pallas_call(
        functools.partial(_proj_heads_kernel, head_dim=D),
        out_shape=jax.ShapeDtypeStruct((nh, B, S, D), jnp.bfloat16),
        grid=grid,
        in_specs=[pl.BlockSpec((None, tm, tk), lambda b, m, n, k: (b, m, k)),
                  pl.BlockSpec((tn, tk), lambda b, m, n, k: (n, k)),
                  pl.BlockSpec((1, tn), lambda b, m, n, k: (0, n))],
        out_specs=pl.BlockSpec((gh, None, tm, D), lambda b, m, n, k: (n, b, m, 0)),
        scratch_shapes=[pltpu.VMEM((tm, tn), jnp.float32)],
        compiler_params=pltpu.CompilerParams(
            dimension_semantics=("parallel", "parallel", "parallel", "arbitrary")),
    )(x, w, b.reshape(1, N))


# ---------------------------- output projection -------------------------------
def _out_proj_kernel(a_ref, w_ref, b_ref, o_ref, acc_ref):
    h = pl.program_id(3)

    @pl.when(h == 0)
    def _init():
        acc_ref[...] = jnp.broadcast_to(b_ref[...], acc_ref.shape)

    # a: (tm, D) bf16, w: (tn, D) bf16 -> contract over the head_dim axis; the
    # head axis is the reduction grid axis, so no (B,H,S,D)->(B,S,E) transpose.
    acc_ref[...] += lax.dot_general(
        a_ref[...], w_ref[...], (((1,), (1,)), ((), ())),
        preferred_element_type=jnp.float32)

    @pl.when(h == pl.num_programs(3) - 1)
    def _store():
        o_ref[...] = acc_ref[...].astype(o_ref.dtype)


def out_projection(attn_heads, wo_heads, bo, out_dtype):
    """attn_heads (H,B,S,D) bf16, wo_heads (H,E,D) bf16, bo (E,) -> (B,S,E)."""
    H, B, S, D = attn_heads.shape
    E = wo_heads.shape[1]
    tm = _pick_tile(S, (256, 128))
    tn = _pick_tile(E, (512, 256, 128))
    return pl.pallas_call(
        _out_proj_kernel,
        out_shape=jax.ShapeDtypeStruct((B, S, E), out_dtype),
        grid=(B, S // tm, E // tn, H),
        in_specs=[pl.BlockSpec((None, None, tm, D), lambda b, m, n, h: (h, b, m, 0)),
                  pl.BlockSpec((None, tn, D), lambda b, m, n, h: (h, n, 0)),
                  pl.BlockSpec((1, tn), lambda b, m, n, h: (0, n))],
        out_specs=pl.BlockSpec((None, tm, tn), lambda b, m, n, h: (b, m, n)),
        scratch_shapes=[pltpu.VMEM((tm, tn), jnp.float32)],
        compiler_params=pltpu.CompilerParams(
            dimension_semantics=("parallel", "parallel", "parallel", "arbitrary")),
    )(attn_heads, wo_heads, bo.reshape(1, E))


# --------------------------- flash attention kernel ---------------------------
def _kv_bounds(h, qi, *, tq, bk, window, causal_heads):
    """Live kv-block range [kv_lo, kv_hi] for this (head, q-tile)."""
    last_row = qi * tq + (tq - 1)
    kv_hi = last_row // bk                                   # causal frontier
    first_allowed = jnp.maximum(qi * tq - (window - 1), 0)   # sparse window start
    kv_lo_sparse = first_allowed // bk
    kv_lo = jnp.where(h < causal_heads, 0, kv_lo_sparse)
    return kv_lo, kv_hi


def _kv_block_index(h, qi, kvi, *, tq, bk, window, causal_heads):
    kv_lo, kv_hi = _kv_bounds(h, qi, tq=tq, bk=bk, window=window,
                              causal_heads=causal_heads)
    # Clamp dead iterations onto the last live block -> Pallas skips their DMA.
    return jnp.minimum(kv_lo + kvi, kv_hi)


def _attn_kernel(q_ref, k_ref, v_ref, cosq_ref, sinq_ref, cosk_ref, sink_ref,
                 kp_ref, vmean_ref, o_ref, qrot_ref, m_ref, l_ref, acc_ref, *,
                 seq_len, window, causal_heads, inv_scale):
    h = pl.program_id(1)
    qi = pl.program_id(2)
    kvi = pl.program_id(3)
    tq, D = q_ref.shape
    bk = k_ref.shape[0]
    Dh = D // 2

    kv_lo, kv_hi = _kv_bounds(h, qi, tq=tq, bk=bk, window=window,
                              causal_heads=causal_heads)
    kv_blk = jnp.minimum(kv_lo + kvi, kv_hi)      # matches the index maps
    live = (kv_lo + kvi) <= kv_hi

    @pl.when(kvi == 0)
    def _init():
        # RoPE for q, hoisted to the first kv iteration of each (b, h, q-tile);
        # q arrives in [even | odd] half layout (de-interleave folded into the
        # weights); cos/sin tables are full-lane (tq, D); pre-scaled by 1/sqrt(D).
        q = q_ref[...].astype(jnp.float32)
        q_sw = jnp.concatenate([q[:, Dh:], q[:, :Dh]], axis=-1)
        qrot_ref[...] = ((q * cosq_ref[...] + q_sw * sinq_ref[...]) * inv_scale
                         ).astype(jnp.bfloat16)
        m_ref[...] = jnp.full_like(m_ref, -jnp.inf)
        l_ref[...] = jnp.zeros_like(l_ref)
        acc_ref[...] = jnp.zeros_like(acc_ref)

    @pl.when(live)
    def _compute():
        # RoPE for this kv block of keys (full-lane form).
        k = k_ref[...].astype(jnp.float32)
        k_sw = jnp.concatenate([k[:, Dh:], k[:, :Dh]], axis=-1)
        k_rot = (k * cosk_ref[...] + k_sw * sink_ref[...]).astype(jnp.bfloat16)

        # Single D-wide bf16 MXU contraction; 1/sqrt(D) already folded into q.
        s = lax.dot_general(qrot_ref[...], k_rot, (((1,), (1,)), ((), ())),
                            preferred_element_type=jnp.float32)      # (tq, bk)

        # key padding as an additive 0/-1e30 bias (broadcast over rows)
        s = s + kp_ref[...]

        # structural mask: allowed iff 0 <= row - col < win_eff
        rel = (lax.broadcasted_iota(jnp.int32, (tq, bk), 0) -
               lax.broadcasted_iota(jnp.int32, (tq, bk), 1))
        diff = rel + (qi * tq - kv_blk * bk)
        win_eff = jnp.where(h < causal_heads, jnp.int32(seq_len), jnp.int32(window))
        s = jnp.where((diff < 0) | (diff >= win_eff), _MASK_VALUE, s)

        # Online softmax.
        m_prev = m_ref[...]
        m_new = jnp.maximum(m_prev, jnp.max(s, axis=-1, keepdims=True))
        alpha = jnp.exp(m_prev - m_new)
        p = jnp.exp(s - m_new)
        l_ref[...] = alpha * l_ref[...] + jnp.sum(p, axis=-1, keepdims=True)
        acc_ref[...] = alpha * acc_ref[...] + jnp.dot(
            p.astype(jnp.bfloat16), v_ref[...], preferred_element_type=jnp.float32)
        m_ref[...] = m_new

    @pl.when(kvi == pl.num_programs(3) - 1)
    def _finalize():
        # Rows whose every attendable key was padded: the torch reference gives a
        # uniform softmax over ALL keys -> mean of V, supplied via vmean_ref.
        degenerate = m_ref[...] <= _MASK_VALUE
        out = acc_ref[...] * pl.reciprocal(l_ref[...], approx=True)
        out = jnp.where(degenerate, vmean_ref[...], out)
        o_ref[...] = out.astype(o_ref.dtype)


# --------------------------------- Params -------------------------------------
def init_params(key, embed_dim):
    ks = jax.random.split(key, 8)
    bound = 1.0 / math.sqrt(embed_dim)

    def u(k, shape):
        return jax.random.uniform(k, shape, jnp.float32, -bound, bound)

    return {
        "wq": u(ks[0], (embed_dim, embed_dim)), "bq": u(ks[1], (embed_dim,)),
        "wk": u(ks[2], (embed_dim, embed_dim)), "bk": u(ks[3], (embed_dim,)),
        "wv": u(ks[4], (embed_dim, embed_dim)), "bv": u(ks[5], (embed_dim,)),
        "wo": u(ks[6], (embed_dim, embed_dim)), "bo": u(ks[7], (embed_dim,)),
    }


def prepare_params(params, num_heads):
    """One-time prep: fold the RoPE even/odd de-interleave into the q/k projection
    output channels, fuse q/k/v into a single (3E, E) bf16 GEMM weight, and
    reshape the out-projection weight to (H, E, D) for the head-reduction GEMM."""
    E = params["wq"].shape[0]
    D = E // num_heads
    perm_head = jnp.concatenate([jnp.arange(0, D, 2), jnp.arange(1, D, 2)])
    perm = (jnp.arange(num_heads)[:, None] * D + perm_head[None, :]).reshape(-1)
    w_qkv = jnp.concatenate(
        [params["wq"][perm], params["wk"][perm], params["wv"]],
        axis=0).astype(jnp.bfloat16)                                   # (3E, E)
    b_qkv = jnp.concatenate(
        [params["bq"][perm], params["bk"][perm], params["bv"]], axis=0)  # (3E,) f32
    wo_heads = params["wo"].reshape(E, num_heads, D).transpose(1, 0, 2) \
        .astype(jnp.bfloat16)                                          # (H, E, D)
    return {"w_qkv": w_qkv, "b_qkv": b_qkv, "wo_heads": wo_heads, "bo": params["bo"]}


# -------------------------------- Forward -------------------------------------
def hybrid_multihead_attention(query, key, value, prepared_params, *, num_heads,
                               causal_heads=0, sparse_window_size=63,
                               key_padding_mask=None, is_self_attention=None):
    B, S, E = query.shape
    H = num_heads
    D = E // H

    if is_self_attention is None:
        # NOTE: under jit the same array traces as distinct tracers -> pass the
        # flag explicitly to keep the fused single-GEMM QKV path.
        is_self_attention = (query is key) and (key is value)

    if is_self_attention:
        qkv_heads = project_heads(query, prepared_params["w_qkv"],
                                  prepared_params["b_qkv"], D)         # (3H,B,S,D) bf16
    else:
        wq, wk, wv = jnp.split(prepared_params["w_qkv"], 3, axis=0)
        bq, bk_, bv = jnp.split(prepared_params["b_qkv"], 3, axis=0)
        qkv_heads = jnp.concatenate([project_heads(query, wq, bq, D),
                                     project_heads(key, wk, bk_, D),
                                     project_heads(value, wv, bv, D)], axis=0)

    # Full-lane rotary tables: cos_full = [cos|cos], sin_signed = [-sin|sin].
    inv_freq = 1.0 / (10000.0 ** (jnp.arange(0, D, 2, dtype=jnp.float32) / D))
    freqs = jnp.outer(jnp.arange(S, dtype=jnp.float32), inv_freq)      # (S, D/2)
    cos_full = jnp.concatenate([jnp.cos(freqs), jnp.cos(freqs)], axis=-1)
    sin_signed = jnp.concatenate([-jnp.sin(freqs), jnp.sin(freqs)], axis=-1)

    if key_padding_mask is None:
        kp_bias = jnp.zeros((B, 1, S), jnp.float32)
        v_mean = jnp.zeros((H, B, 1, D), jnp.float32)   # never selected
    else:
        kp_bias = jnp.where(key_padding_mask, _MASK_VALUE, 0.0) \
            .astype(jnp.float32).reshape(B, 1, S)
        # Fallback value for fully-masked rows (reference: uniform over ALL keys).
        v_mean = jnp.mean(qkv_heads[2 * H:].astype(jnp.float32), axis=2,
                          keepdims=True)                               # (H,B,1,D)

    # 256-wide tiles feed the 256x256 MXU on v6e/v7x while keeping the per-step
    # VMEM footprint ~1-2 MiB (safe under v7x's 32 MiB scoped default).
    tq = _pick_tile(S, (256, 128))
    bk = _pick_tile(S, (256, 128))
    n_q = S // tq
    n_kv = S // bk
    if causal_heads > 0:
        n_kv_iters = n_kv
    else:
        # all-sparse: only a band of kv blocks around each q tile is ever live
        n_kv_iters = min(n_kv, pl.cdiv(tq + sparse_window_size - 1, bk) + 1)

    kvmap = functools.partial(_kv_block_index, tq=tq, bk=bk,
                              window=sparse_window_size, causal_heads=causal_heads)

    q_spec = pl.BlockSpec((None, None, tq, D), lambda b, h, qi, kvi: (h, b, qi, 0))
    k_spec = pl.BlockSpec((None, None, bk, D),
                          lambda b, h, qi, kvi: (H + h, b, kvmap(h, qi, kvi), 0))
    v_spec = pl.BlockSpec((None, None, bk, D),
                          lambda b, h, qi, kvi: (2 * H + h, b, kvmap(h, qi, kvi), 0))
    cq_spec = pl.BlockSpec((tq, D), lambda b, h, qi, kvi: (qi, 0))
    ck_spec = pl.BlockSpec((bk, D), lambda b, h, qi, kvi: (kvmap(h, qi, kvi), 0))
    kp_spec = pl.BlockSpec((None, 1, bk),
                           lambda b, h, qi, kvi: (b, 0, kvmap(h, qi, kvi)))
    vm_spec = pl.BlockSpec((None, None, 1, D), lambda b, h, qi, kvi: (h, b, 0, 0))
    out_spec = pl.BlockSpec((None, None, tq, D), lambda b, h, qi, kvi: (h, b, qi, 0))

    attn = pl.pallas_call(
        functools.partial(_attn_kernel, seq_len=S, window=sparse_window_size,
                          causal_heads=causal_heads, inv_scale=1.0 / math.sqrt(D)),
        out_shape=jax.ShapeDtypeStruct((H, B, S, D), jnp.bfloat16),
        grid=(B, H, n_q, n_kv_iters),
        in_specs=[q_spec, k_spec, v_spec, cq_spec, cq_spec, ck_spec, ck_spec,
                  kp_spec, vm_spec],
        out_specs=out_spec,
        scratch_shapes=[pltpu.VMEM((tq, D), jnp.bfloat16),   # rotated+scaled q
                        pltpu.VMEM((tq, 1), jnp.float32),    # m (running max)
                        pltpu.VMEM((tq, 1), jnp.float32),    # l (running denom)
                        pltpu.VMEM((tq, D), jnp.float32)],   # acc
        compiler_params=pltpu.CompilerParams(
            dimension_semantics=("parallel", "parallel", "parallel", "arbitrary")),
    )(qkv_heads, qkv_heads, qkv_heads, cos_full, sin_signed, cos_full, sin_signed,
      kp_bias, v_mean)

    return out_projection(attn, prepared_params["wo_heads"], prepared_params["bo"],
                          out_dtype=query.dtype)


# ---------------------------- pure-JAX reference ------------------------------
def reference(query, key, value, params, *, num_heads, causal_heads,
              sparse_window_size, key_padding_mask):
    B, S, E = query.shape
    H, D = num_heads, E // num_heads
    hi = lax.Precision.HIGHEST

    def lin(x, w, b):
        return jnp.einsum("bse,oe->bso", x, w, precision=hi) + b

    def heads(x):
        return x.reshape(B, S, H, D).transpose(0, 2, 1, 3)

    q, k, v = (heads(lin(query, params["wq"], params["bq"])),
               heads(lin(key, params["wk"], params["bk"])),
               heads(lin(value, params["wv"], params["bv"])))

    inv_freq = 1.0 / (10000.0 ** (jnp.arange(0, D, 2, dtype=jnp.float32) / D))
    freqs = jnp.outer(jnp.arange(S, dtype=jnp.float32), inv_freq)
    cos, sin = jnp.cos(freqs), jnp.sin(freqs)

    def rope(x):
        xe, xo = x[..., ::2], x[..., 1::2]
        re = xe * cos - xo * sin
        ro = xe * sin + xo * cos
        return jnp.stack([re, ro], axis=-1).reshape(x.shape)

    q, k = rope(q), rope(k)
    scores = jnp.einsum("bhqd,bhkd->bhqk", q, k, precision=hi) / math.sqrt(D)
    neg_inf = -jnp.inf
    if key_padding_mask is not None:
        scores = jnp.where(key_padding_mask[:, None, None, :], neg_inf, scores)
    r = jnp.arange(S)[:, None]
    c = jnp.arange(S)[None, :]
    causal = c > r
    sparse = (c > r) | (c < r - (sparse_window_size - 1))
    head_mask = jnp.where(jnp.arange(H)[:, None, None] < causal_heads,
                          causal[None], sparse[None])
    scores = jnp.where(head_mask[None], neg_inf, scores)
    allm = jnp.all(scores == neg_inf, axis=-1, keepdims=True)
    scores = jnp.where(allm, 0.0, scores)
    w = jax.nn.softmax(scores, axis=-1)
    out = jnp.einsum("bhqk,bhkd->bhqd", w, v, precision=hi)
    out = out.transpose(0, 2, 1, 3).reshape(B, S, E)
    return lin(out, params["wo"], params["bo"])


# ----------------------------------- main -------------------------------------
if __name__ == "__main__":
    B, S, E, H = 2, 8, 32, 4
    causal_heads = 2
    window = 4

    root = jax.random.PRNGKey(0)
    kx, kq, kk, kv_key, kparam = jax.random.split(root, 5)
    params = init_params(kparam, E)
    prepared = prepare_params(params, H)

    # Test 1: self-attention (fused-QKV path) with a key-padding mask that also
    # produces fully-masked rows (keys 0,1 of batch 1 are padded).
    x = jax.random.normal(kx, (B, S, E), jnp.float32)
    kpm = jnp.zeros((B, S), jnp.bool_).at[1, :2].set(True)
    out = hybrid_multihead_attention(
        x, x, x, prepared, num_heads=H, causal_heads=causal_heads,
        sparse_window_size=window, key_padding_mask=kpm, is_self_attention=True)
    out = jax.block_until_ready(out)
    ref = reference(x, x, x, params, num_heads=H, causal_heads=causal_heads,
                    sparse_window_size=window, key_padding_mask=kpm)
    assert out.shape == (B, S, E) and out.dtype == jnp.float32
    err1 = float(jnp.max(jnp.abs(out - ref)))
    # bf16 weights + bf16 activation intermediates (per perf feedback) vs f32 ref
    assert err1 < 5e-2, err1

    # Test 2: distinct query/key/value tensors (unfused path), no padding mask.
    q_in = jax.random.normal(kq, (B, S, E), jnp.float32)
    k_in = jax.random.normal(kk, (B, S, E), jnp.float32)
    v_in = jax.random.normal(kv_key, (B, S, E), jnp.float32)
    out2 = jax.block_until_ready(hybrid_multihead_attention(
        q_in, k_in, v_in, prepared, num_heads=H, causal_heads=causal_heads,
        sparse_window_size=window, key_padding_mask=None, is_self_attention=False))
    ref2 = reference(q_in, k_in, v_in, params, num_heads=H,
                     causal_heads=causal_heads, sparse_window_size=window,
                     key_padding_mask=None)
    err2 = float(jnp.max(jnp.abs(out2 - ref2)))
    assert err2 < 5e-2, err2

    # TODO(synk): F.dropout in training mode not implemented (module default p=0.0 -> identity).
    print("KERNEL_OK")
</pallas_src>

<mosaic_0001>
module attributes {stable_mosaic.version = 11 : i64} {
  func.func @_proj_heads_kernel(%arg0: i32, %arg1: i32, %arg2: i32, %arg3: i32, %arg4: memref<1x8x32xf32, #tpu.memory_space<vmem>>, %arg5: memref<96x32xbf16, #tpu.memory_space<vmem>>, %arg6: memref<1x96xf32, #tpu.memory_space<vmem>>, %arg7: memref<12x1x8x8xbf16, #tpu.memory_space<vmem>>, %arg8: memref<8x96xf32, #tpu.memory_space<vmem>>) attributes {dimension_semantics = [#tpu.dimension_semantics<parallel>, #tpu.dimension_semantics<parallel>, #tpu.dimension_semantics<parallel>, #tpu.dimension_semantics<arbitrary>], iteration_bounds = array<i64: 2, 1, 1, 1>, scalar_prefetch = 0 : i64, scratch_operands = 1 : i64, tpu.core_type = #tpu.core_type<tc>, window_params = [{transform_indices = @transform_0, window_bounds = array<i64: 1, 8, 32>}, {transform_indices = @transform_1, window_bounds = array<i64: 96, 32>}, {transform_indices = @transform_2, window_bounds = array<i64: 1, 96>}, {transform_indices = @transform_3, window_bounds = array<i64: 12, 1, 8, 8>}]} {
    %c0_i32 = arith.constant 0 : i32
    %0 = arith.cmpi eq, %arg3, %c0_i32 : i32
    %1 = arith.extui %0 : i1 to i32
    %c0_i32_0 = arith.constant 0 : i32
    %2 = arith.cmpi ne, %1, %c0_i32_0 : i32
    scf.if %2 {
      %c0_11 = arith.constant 0 : index
      %c0_12 = arith.constant 0 : index
      %14 = vector.load %arg6[%c0_11, %c0_12] : memref<1x96xf32, #tpu.memory_space<vmem>>, vector<1x96xf32>
      %15 = vector.shape_cast %14 : vector<1x96xf32> to vector<1x96xf32>
      %16 = vector.broadcast %15 : vector<1x96xf32> to vector<8x96xf32>
      %c0_13 = arith.constant 0 : index
      %c0_14 = arith.constant 0 : index
      %17 = vector.load %arg8[%c0_13, %c0_14] : memref<8x96xf32, #tpu.memory_space<vmem>>, vector<8x96xf32>
      tpu.vector_store %arg8[%c0_13, %c0_14], %16 {strides = array<i32>} : memref<8x96xf32, #tpu.memory_space<vmem>>, vector<8x96xf32>,
    } else {
    }
    %c0 = arith.constant 0 : index
    %c0_1 = arith.constant 0 : index
    %3 = vector.load %arg8[%c0, %c0_1] : memref<8x96xf32, #tpu.memory_space<vmem>>, vector<8x96xf32>
    %c0_2 = arith.constant 0 : index
    %c0_3 = arith.constant 0 : index
    %c0_4 = arith.constant 0 : index
    %4 = vector.load %arg4[%c0_2, %c0_3, %c0_4] : memref<1x8x32xf32, #tpu.memory_space<vmem>>, vector<1x8x32xf32>
    %5 = vector.shape_cast %4 : vector<1x8x32xf32> to vector<8x32xf32>
    %6 = arith.truncf %5 : vector<8x32xf32> to vector<8x32xbf16>
    %c0_5 = arith.constant 0 : index
    %c0_6 = arith.constant 0 : index
    %7 = vector.load %arg5[%c0_5, %c0_6] : memref<96x32xbf16, #tpu.memory_space<vmem>>, vector<96x32xbf16>
    %cst = arith.constant dense<0.000000e+00> : vector<8x96xf32>
    %8 = tpu.matmul %6, %7, %cst {dimension_numbers = #tpu.dot_dimension_numbers<[1], [1], [0], [0], [0, 0, 1, 0], [], []>} : vector<8x32xbf16>, vector<96x32xbf16>, vector<8x96xf32> -> vector<8x96xf32>
    %9 = arith.addf %3, %8 : vector<8x96xf32>
    %c0_7 = arith.constant 0 : index
    %c0_8 = arith.constant 0 : index
    %10 = vector.load %arg8[%c0_7, %c0_8] : memref<8x96xf32, #tpu.memory_space<vmem>>, vector<8x96xf32>
    tpu.vector_store %arg8[%c0_7, %c0_8], %9 {strides = array<i32>} : memref<8x96xf32, #tpu.memory_space<vmem>>, vector<8x96xf32>,
    %c0_i32_9 = arith.constant 0 : i32
    %11 = arith.cmpi eq, %arg3, %c0_i32_9 : i32
    %12 = arith.extui %11 : i1 to i32
    %c0_i32_10 = arith.constant 0 : i32
    %13 = arith.cmpi ne, %12, %c0_i32_10 : i32
    scf.if %13 {
      %c0_11 = arith.constant 0 : index
      %c0_12 = arith.constant 0 : index
      %14 = vector.load %arg8[%c0_11, %c0_12] : memref<8x96xf32, #tpu.memory_space<vmem>>, vector<8x96xf32>
      %15 = vector.extract_strided_slice %14 {offsets = [0, 0], sizes = [8, 8], strides = [1, 1]} : vector<8x96xf32> to vector<8x8xf32>
      %16 = arith.truncf %15 : vector<8x8xf32> to vector<8x8xbf16>
      %c0_13 = arith.constant 0 : index
      %c0_14 = arith.constant 0 : index
      %c0_15 = arith.constant 0 : index
      %c0_16 = arith.constant 0 : index
      %17 = vector.load %arg7[%c0_13, %c0_14, %c0_15, %c0_16] : memref<12x1x8x8xbf16, #tpu.memory_space<vmem>>, vector<1x1x8x8xbf16>
      %18 = vector.shape_cast %17 : vector<1x1x8x8xbf16> to vector<8x8xbf16>
      %19 = vector.shape_cast %16 : vector<8x8xbf16> to vector<1x1x8x8xbf16>
      tpu.vector_store %arg7[%c0_13, %c0_14, %c0_15, %c0_16], %19 {strides = array<i32>} : memref<12x1x8x8xbf16, #tpu.memory_space<vmem>>, vector<1x1x8x8xbf16>,
      %20 = vector.extract_strided_slice %14 {offsets = [0, 8], sizes = [8, 8], strides = [1, 1]} : vector<8x96xf32> to vector<8x8xf32>
      %21 = arith.truncf %20 : vector<8x8xf32> to vector<8x8xbf16>
      %c1 = arith.constant 1 : index
      %c0_17 = arith.constant 0 : index
      %c0_18 = arith.constant 0 : index
      %c0_19 = arith.constant 0 : index
      %22 = vector.load %arg7[%c1, %c0_17, %c0_18, %c0_19] : memref<12x1x8x8xbf16, #tpu.memory_space<vmem>>, vector<1x1x8x8xbf16>
      %23 = vector.shape_cast %22 : vector<1x1x8x8xbf16> to vector<8x8xbf16>
      %24 = vector.shape_cast %21 : vector<8x8xbf16> to vector<1x1x8x8xbf16>
      tpu.vector_store %arg7[%c1, %c0_17, %c0_18, %c0_19], %24 {strides = array<i32>} : memref<12x1x8x8xbf16, #tpu.memory_space<vmem>>, vector<1x1x8x8xbf16>,
      %25 = vector.extract_strided_slice %14 {offsets = [0, 16], sizes = [8, 8], strides = [1, 1]} : vector<8x96xf32> to vector<8x8xf32>
      %26 = arith.truncf %25 : vector<8x8xf32> to vector<8x8xbf16>
      %c2 = arith.constant 2 : index
      %c0_20 = arith.constant 0 : index
      %c0_21 = arith.constant 0 : index
      %c0_22 = arith.constant 0 : index
      %27 = vector.load %arg7[%c2, %c0_20, %c0_21, %c0_22] : memref<12x1x8x8xbf16, #tpu.memory_space<vmem>>, vector<1x1x8x8xbf16>
      %28 = vector.shape_cast %27 : vector<1x1x8x8xbf16> to vector<8x8xbf16>
      %29 = vector.shape_cast %26 : vector<8x8xbf16> to vector<1x1x8x8xbf16>
      tpu.vector_store %arg7[%c2, %c0_20, %c0_21, %c0_22], %29 {strides = array<i32>} : memref<12x1x8x8xbf16, #tpu.memory_space<vmem>>, vector<1x1x8x8xbf16>,
      %30 = vector.extract_strided_slice %14 {offsets = [0, 24], sizes = [8, 8], strides = [1, 1]} : vector<8x96xf32> to vector<8x8xf32>
      %31 = arith.truncf %30 : vector<8x8xf32> to vector<8x8xbf16>
      %c3 = arith.constant 3 : index
      %c0_23 = arith.constant 0 : index
      %c0_24 = arith.constant 0 : index
      %c0_25 = arith.constant 0 : index
      %32 = vector.load %arg7[%c3, %c0_23, %c0_24, %c0_25] : memref<12x1x8x8xbf16, #tpu.memory_space<vmem>>, vector<1x1x8x8xbf16>
      %33 = vector.shape_cast %32 : vector<1x1x8x8xbf16> to vector<8x8xbf16>
      %34 = vector.shape_cast %31 : vector<8x8xbf16> to vector<1x1x8x8xbf16>
      tpu.vector_store %arg7[%c3, %c0_23, %c0_24, %c0_25], %34 {strides = array<i32>} : memref<12x1x8x8xbf16, #tpu.memory_space<vmem>>, vector<1x1x8x8xbf16>,
      %35 = vector.extract_strided_slice %14 {offsets = [0, 32], sizes = [8, 8], strides = [1, 1]} : vector<8x96xf32> to vector<8x8xf32>
      %36 = arith.truncf %35 : vector<8x8xf32> to vector<8x8xbf16>
      %c4 = arith.constant 4 : index
      %c0_26 = arith.constant 0 : index
      %c0_27 = arith.constant 0 : index
      %c0_28 = arith.constant 0 : index
      %37 = vector.load %arg7[%c4, %c0_26, %c0_27, %c0_28] : memref<12x1x8x8xbf16, #tpu.memory_space<vmem>>, vector<1x1x8x8xbf16>
      %38 = vector.shape_cast %37 : vector<1x1x8x8xbf16> to vector<8x8xbf16>
      %39 = vector.shape_cast %36 : vector<8x8xbf16> to vector<1x1x8x8xbf16>
      tpu.vector_store %arg7[%c4, %c0_26, %c0_27, %c0_28], %39 {strides = array<i32>} : memref<12x1x8x8xbf16, #tpu.memory_space<vmem>>, vector<1x1x8x8xbf16>,
      %40 = vector.extract_strided_slice %14 {offsets = [0, 40], sizes = [8, 8], strides = [1, 1]} : vector<8x96xf32> to vector<8x8xf32>
      %41 = arith.truncf %40 : vector<8x8xf32> to vector<8x8xbf16>
      %c5 = arith.constant 5 : index
      %c0_29 = arith.constant 0 : index
      %c0_30 = arith.constant 0 : index
      %c0_31 = arith.constant 0 : index
      %42 = vector.load %arg7[%c5, %c0_29, %c0_30, %c0_31] : memref<12x1x8x8xbf16, #tpu.memory_space<vmem>>, vector<1x1x8x8xbf16>
      %43 = vector.shape_cast %42 : vector<1x1x8x8xbf16> to vector<8x8xbf16>
      %44 = vector.shape_cast %41 : vector<8x8xbf16> to vector<1x1x8x8xbf16>
      tpu.vector_store %arg7[%c5, %c0_29, %c0_30, %c0_31], %44 {strides = array<i32>} : memref<12x1x8x8xbf16, #tpu.memory_space<vmem>>, vector<1x1x8x8xbf16>,
      %45 = vector.extract_strided_slice %14 {offsets = [0, 48], sizes = [8, 8], strides = [1, 1]} : vector<8x96xf32> to vector<8x8xf32>
      %46 = arith.truncf %45 : vector<8x8xf32> to vector<8x8xbf16>
      %c6 = arith.constant 6 : index
      %c0_32 = arith.constant 0 : index
      %c0_33 = arith.constant 0 : index
      %c0_34 = arith.constant 0 : index
      %47 = vector.load %arg7[%c6, %c0_32, %c0_33, %c0_34] : memref<12x1x8x8xbf16, #tpu.memory_space<vmem>>, vector<1x1x8x8xbf16>
      %48 = vector.shape_cast %47 : vector<1x1x8x8xbf16> to vector<8x8xbf16>
      %49 = vector.shape_cast %46 : vector<8x8xbf16> to vector<1x1x8x8xbf16>
      tpu.vector_store %arg7[%c6, %c0_32, %c0_33, %c0_34], %49 {strides = array<i32>} : memref<12x1x8x8xbf16, #tpu.memory_space<vmem>>, vector<1x1x8x8xbf16>,
      %50 = vector.extract_strided_slice %14 {offsets = [0, 56], sizes = [8, 8], strides = [1, 1]} : vector<8x96xf32> to vector<8x8xf32>
      %51 = arith.truncf %50 : vector<8x8xf32> to vector<8x8xbf16>
      %c7 = arith.constant 7 : index
      %c0_35 = arith.constant 0 : index
      %c0_36 = arith.constant 0 : index
      %c0_37 = arith.constant 0 : index
      %52 = vector.load %arg7[%c7, %c0_35, %c0_36, %c0_37] : memref<12x1x8x8xbf16, #tpu.memory_space<vmem>>, vector<1x1x8x8xbf16>
      %53 = vector.shape_cast %52 : vector<1x1x8x8xbf16> to vector<8x8xbf16>
      %54 = vector.shape_cast %51 : vector<8x8xbf16> to vector<1x1x8x8xbf16>
      tpu.vector_store %arg7[%c7, %c0_35, %c0_36, %c0_37], %54 {strides = array<i32>} : memref<12x1x8x8xbf16, #tpu.memory_space<vmem>>, vector<1x1x8x8xbf16>,
      %55 = vector.extract_strided_slice %14 {offsets = [0, 64], sizes = [8, 8], strides = [1, 1]} : vector<8x96xf32> to vector<8x8xf32>
      %56 = arith.truncf %55 : vector<8x8xf32> to vector<8x8xbf16>
      %c8 = arith.constant 8 : index
      %c0_38 = arith.constant 0 : index
      %c0_39 = arith.constant 0 : index
      %c0_40 = arith.constant 0 : index
      %57 = vector.load %arg7[%c8, %c0_38, %c0_39, %c0_40] : memref<12x1x8x8xbf16, #tpu.memory_space<vmem>>, vector<1x1x8x8xbf16>
      %58 = vector.shape_cast %57 : vector<1x1x8x8xbf16> to vector<8x8xbf16>
      %59 = vector.shape_cast %56 : vector<8x8xbf16> to vector<1x1x8x8xbf16>
      tpu.vector_store %arg7[%c8, %c0_38, %c0_39, %c0_40], %59 {strides = array<i32>} : memref<12x1x8x8xbf16, #tpu.memory_space<vmem>>, vector<1x1x8x8xbf16>,
      %60 = vector.extract_strided_slice %14 {offsets = [0, 72], sizes = [8, 8], strides = [1, 1]} : vector<8x96xf32> to vector<8x8xf32>
      %61 = arith.truncf %60 : vector<8x8xf32> to vector<8x8xbf16>
      %c9 = arith.constant 9 : index
      %c0_41 = arith.constant 0 : index
      %c0_42 = arith.constant 0 : index
      %c0_43 = arith.constant 0 : index
      %62 = vector.load %arg7[%c9, %c0_41, %c0_42, %c0_43] : memref<12x1x8x8xbf16, #tpu.memory_space<vmem>>, vector<1x1x8x8xbf16>
      %63 = vector.shape_cast %62 : vector<1x1x8x8xbf16> to vector<8x8xbf16>
      %64 = vector.shape_cast %61 : vector<8x8xbf16> to vector<1x1x8x8xbf16>
      tpu.vector_store %arg7[%c9, %c0_41, %c0_42, %c0_43], %64 {strides = array<i32>} : memref<12x1x8x8xbf16, #tpu.memory_space<vmem>>, vector<1x1x8x8xbf16>,
      %65 = vector.extract_strided_slice %14 {offsets = [0, 80], sizes = [8, 8], strides = [1, 1]} : vector<8x96xf32> to vector<8x8xf32>
      %66 = arith.truncf %65 : vector<8x8xf32> to vector<8x8xbf16>
      %c10 = arith.constant 10 : index
      %c0_44 = arith.constant 0 : index
      %c0_45 = arith.constant 0 : index
      %c0_46 = arith.constant 0 : index
      %67 = vector.load %arg7[%c10, %c0_44, %c0_45, %c0_46] : memref<12x1x8x8xbf16, #tpu.memory_space<vmem>>, vector<1x1x8x8xbf16>
      %68 = vector.shape_cast %67 : vector<1x1x8x8xbf16> to vector<8x8xbf16>
      %69 = vector.shape_cast %66 : vector<8x8xbf16> to vector<1x1x8x8xbf16>
      tpu.vector_store %arg7[%c10, %c0_44, %c0_45, %c0_46], %69 {strides = array<i32>} : memref<12x1x8x8xbf16, #tpu.memory_space<vmem>>, vector<1x1x8x8xbf16>,
      %70 = vector.extract_strided_slice %14 {offsets = [0, 88], sizes = [8, 8], strides = [1, 1]} : vector<8x96xf32> to vector<8x8xf32>
      %71 = arith.truncf %70 : vector<8x8xf32> to vector<8x8xbf16>
      %c11 = arith.constant 11 : index
      %c0_47 = arith.constant 0 : index
      %c0_48 = arith.constant 0 : index
      %c0_49 = arith.constant 0 : index
      %72 = vector.load %arg7[%c11, %c0_47, %c0_48, %c0_49] : memref<12x1x8x8xbf16, #tpu.memory_space<vmem>>, vector<1x1x8x8xbf16>
      %73 = vector.shape_cast %72 : vector<1x1x8x8xbf16> to vector<8x8xbf16>
      %74 = vector.shape_cast %71 : vector<8x8xbf16> to vector<1x1x8x8xbf16>
      tpu.vector_store %arg7[%c11, %c0_47, %c0_48, %c0_49], %74 {strides = array<i32>} : memref<12x1x8x8xbf16, #tpu.memory_space<vmem>>, vector<1x1x8x8xbf16>,
    } else {
    }
    return
  }
  func.func @transform_0(%arg0: i32, %arg1: i32, %arg2: i32, %arg3: i32) -> (i32, i32, i32) {
    %c0_i32 = arith.constant 0 : i32
    return %arg0, %arg1, %arg3 : i32, i32, i32
  }
  func.func @transform_1(%arg0: i32, %arg1: i32, %arg2: i32, %arg3: i32) -> (i32, i32) {
    %c0_i32 = arith.constant 0 : i32
    return %arg2, %arg3 : i32, i32
  }
  func.func @transform_2(%arg0: i32, %arg1: i32, %arg2: i32, %arg3: i32) -> (i32, i32) {
    %c0_i32 = arith.constant 0 : i32
    %c0_i32_0 = arith.constant 0 : i32
    return %c0_i32, %arg2 : i32, i32
  }
  func.func @transform_3(%arg0: i32, %arg1: i32, %arg2: i32, %arg3: i32) -> (i32, i32, i32, i32) {
    %c0_i32 = arith.constant 0 : i32
    %c0_i32_0 = arith.constant 0 : i32
    return %arg2, %arg0, %arg1, %c0_i32 : i32, i32, i32, i32
  }
}

</mosaic_0001>

<bundles_post_ra>
// kernel: tpu_custom_call.1
= control target key start
LH: loop header
LB: loop body
LE: loop exit
PB: predicated region body
PF: predicated region fallthrough
CT: control target
= control target key end

     0   :  { %s798_s12 = smov 0   ;;  %s800_s13 = smov 0   ;;  %s936_s0 = inlined_call_operand.vmem [shape: f32[2,8,32], index: 0, kind: input, shape index: {}]   ;;  %s937_s1 = inlined_call_operand.vmem [shape: bf16[96,32], index: 1, kind: input, shape index: {}]   ;;  %s938_s2 = inlined_call_operand.vmem [shape: f32[1,96], index: 2, kind: input, shape index: {}]   ;;  %s939_s3 = inlined_call_operand.vmem [shape: bf16[12,2,8,8], index: 3, kind: output, shape index: {}]  }
   0x1   :  { %s802_s14 = smov 0   ;;  %s804_s15 = smov 0  }
   0x2   :  { %s806_s16 = smov 0  }
   0x3 LB: > { %s621_s17 = sadd.s32 4294967295, %s765_s16   ;;  %s39_s18 = sadd.s32 1, %s761_s15  ;;  %s765_s16 = sphi %s806_s16, %s13_s16   ;;  %s761_s15 = sphi %s804_s15, %s944_s15   ;;  %s757_s14 = sphi %s802_s14, %s943_s14   ;;  %s753_s13 = sphi %s800_s13, %s942_s13   ;;  %s749_s12 = sphi %s798_s12, %s941_s12  }
   0x4   : > { %p41_p0 = scmp.ge.s32.totalorder %s39_s18, 2  ;;  %s134_s19 = sadd.s32 1, %s753_s13 }
   0x5   : > { %p144_p1 = scmp.ne.s32.totalorder %s753_s13, %s749_s12  ;;  %p145_p2 = scmp.eq.s32.totalorder %s621_s17, 1 }
   0x6   : > { %s946_s18 = smov (%p41_p0, %s39_s18), 0  ;;  %p627_p4 = scmp.ge.s32.totalorder %s765_s16, 1 }
   0x7   : > { %p830_p3 = por %p145_p2, %p144_p1  ;;  %s128_s21 = ssub.s32 %s761_s15, %s946_s18 }
   0x8   : > { %p200_p5 = scmp.lt.s32.totalorder %s765_s16, 3  ;;  %p132_p6 = scmp.eq.s32.totalorder %s128_s21, 0 }
   0xa   : > { %p201_p7 = pnand %p627_p4, %p200_p5 }
   0xb   : > { %s839_s22 = scalar_select %p132_p6, %s753_s13, %s134_s19  }
   0xc   : > { %204 = sbr.rel (%p201_p7) target bundleno = 353 (0x161), region = 32  ;;  %p239_p8 = scmp.lt.s32.totalorder (!%p201_p7), %s757_s14, 1 }
   0xd   : > { %s236_s23 = sand.u32 (!%p201_p7), 1, %s749_s12   ;;  %s767_s25 = smov (!%p201_p7), 88  }
   0xe   : > { %s674_s24 = smul.u32 (!%p201_p7), 48, %s236_s23  ;;  %s768_s26 = smov (!%p201_p7), 104  }
   0xf   : > { %s769_s28 = smov (!%p201_p7), 120   ;;  %s770_s29 = smov (!%p201_p7), 80  }
  0x10   : > { %s877_s27 = scalar_lea.vmem (!%p201_p7), [#allocation3], %s674_s24  ;;  %s771_s12 = smov (!%p201_p7), 96  }
  0x11   : > { %v673_v0 = vld [vmem:[%s937_s1 + $0x28] sm:$0xff]  ;;  %vm318_vm0 = vcmask 261120   ;;  %v672_v2 = vld [vmem:[%s937_s1 + $0x20] sm:$0xff]  ;;  %v671_v4 = vld [vmem:[%s937_s1 + $0x18] sm:$0xff]  ;;  %vm271_vm1 = vcmask 785408   ;;  %s240_s8 = scalar_select %p239_p8, %s757_s14, 1 }
  0x12   : > { %v338_v1 = vsel %vm318_vm0, %v673_v0, 0  ;;  %v335_v3 = vsel %vm318_vm0, %v672_v2, 0  ;;  %v332_v5 = vsel %vm318_vm0, %v671_v4, 0  ;;  %v726_v6 = vld [vmem:[%s938_s2] ss:$0 sm:$0xff]  ;;  %v670_v7 = vld [vmem:[%s937_s1 + $0x10] sm:$0xff] }
  0x13   : > { %342 = vmatpush.bf16.xpose.msra.mxu0 %v338_v1  ;;  %272 = vst.msk [vmem:[#allocation2] sm:$0xff] %vm271_vm1, %v726_v6  ;;  %v329_v8 = vsel %vm318_vm0, %v670_v7, 0  ;;  %v669_v9 = vld [vmem:[%s937_s1 + $0x8] sm:$0xff]  ;;  %v668_v11 = vld [vmem:[%s937_s1] sm:$0xff]  ;;  %s628_s11 = sshll.u32 %s240_s8, 3  ;;  %vm361_vm2 = vcmask 60416  }
  0x14   : > { %v326_v10 = vsel %vm318_vm0, %v669_v9, 0  ;;  %v323_v12 = vsel %vm318_vm0, %v668_v11, 0  ;;  %s248_s21 = scalar_lea.vmem %s936_s0, %s628_s11  ;;  %s772_s30 = smov 112  }
  0x15   : > { %v274_v13 = vld [vmem:[%s248_s21] sm:$0xff]  ;;  %s773_s4 = smov 56   ;;  %s774_s5 = smov 64  }
  0x16   : > { %v275_v14 = vpack.c.bf16 %v274_v13, %v274_v13  ;;  %s775_s6 = smov 72   ;;  %s776_s7 = smov 40  }
  0x17   : > { %s777_s8 = smov 48   ;;  %s665_s9 = sshll.u32 (%p830_p3), %s757_s14, 2 }
  0x18   : > { %s431_s17 = scalar_lea.vmem (%p830_p3), %s939_s3, %s665_s9 }
  0x1a   : > { %v273_v15 = vld [vmem:[#allocation2] sm:$0xff] }
  0x1b   : > { %343 = vmatpush.bf16.xpose.msra.mxu0 %v335_v3 }
  0x23   : > { %344 = vmatpush.bf16.xpose.msra.mxu0 %v332_v5 }
  0x2b   : > { %345 = vmatpush.bf16.xpose.msra.mxu0 %v329_v8 }
  0x33   : > { %346 = vmatpush.bf16.xpose.msra.mxu0 %v326_v10 }
  0x3b   : > { %347 = vmatpush.bf16.xpose.msra.mxu0 %v323_v12 }
  0x42   : > { %653 = vmatmul.msk.bf16.vlgmr.msra.gmra.mxu0 %vm318_vm0, %v275_v14 }
  0xbf   : > { %v349_v16 = vpop.f32.mrf.mxu0 }
  0xc0   : > { %v353_v17 = vadd.f32 %v349_v16, %v273_v15 }
  0xc2   : > { %355 = vst.msk [vmem:[#allocation2] sm:$0xff] %vm271_vm1, %v353_v17 }
  0xc7   : > { %v351_v18 = vpop.f32.mrf.mxu0 }
  0xc9   : > { %v359_v19 = vld [vmem:[#allocation2] sm:$0xff] }
  0xca   : > { %v360_v20 = vpack.c.bf16 %v359_v19, %v359_v19 }
  0xcc   : > { %384 = vrot.lane.b32.xlu2 %v360_v20, %s767_s25  ;;  %374 = vrot.lane.b32.xlu1 %v360_v20, %s768_s26  ;;  %362 = vst.msk [vmem:[%s877_s27] sm:$0xf] %vm361_vm2, %v360_v20 }
  0xcd   : > { %364 = vrot.lane.b32.xlu0 %v360_v20, %s769_s28 }
  0xd3   : > { %v448_v32 = vld [vmem:[%s877_s27] sm:$0xf] (%p830_p3) }
  0xd4   : > { %389 = vrot.lane.b32.xlu2 %v360_v20, %s770_s29  ;;  %379 = vrot.lane.b32.xlu1 %v360_v20, %s771_s12  ;;  %449 = vst [vmem:[%s431_s17] sm:$0xf] (%p830_p3), %v448_v32 }
  0xd5   : > { %369 = vrot.lane.b32.xlu0 %v360_v20, %s772_s30 }
  0xdc   : > { %404 = vrot.lane.b32.xlu2 %v360_v20, %s773_s4  ;;  %399 = vrot.lane.b32.xlu1 %v360_v20, %s774_s5 }
  0xdd   : > { %394 = vrot.lane.b32.xlu0 %v360_v20, %s775_s6 }
  0xe4   : > { %414 = vrot.lane.b32.xlu1 %v360_v20, %s776_s7 }
  0xe5   : > { %409 = vrot.lane.b32.xlu0 %v360_v20, %s777_s8 }
 0x126   : > { %v385_v21 = vpop.permute.xlu2 %384 }
 0x127   : > { %658 = vst.msk [vmem:[%s877_s27 + $0x14] sm:$0xf] %vm361_vm2, %v385_v21 }
 0x12e   : > { %v390_v22 = vpop.permute.xlu2 %389  ;;  %v458_v37 = vld [vmem:[%s877_s27 + $0x14] sm:$0xf] (%p830_p3) }
 0x12f   : > { %659 = vst.msk [vmem:[%s877_s27 + $0x18] sm:$0xf] %vm361_vm2, %v390_v22 }
 0x130   : > { %459 = vst [vmem:[%s431_s17 + $0x28] sm:$0xf] (%p830_p3), %v458_v37 }
 0x136   : > { %v405_v23 = vpop.permute.xlu2 %404  ;;  %v460_v38 = vld [vmem:[%s877_s27 + $0x18] sm:$0xf] (%p830_p3) }
 0x137   : > { %662 = vst.msk [vmem:[%s877_s27 + $0x24] sm:$0xf] %vm361_vm2, %v405_v23 }
 0x138   : > { %461 = vst [vmem:[%s431_s17 + $0x30] sm:$0xf] (%p830_p3), %v460_v38 }
 0x13e   : > { %v375_v24 = vpop.permute.xlu1 %374  ;;  %v466_v41 = vld [vmem:[%s877_s27 + $0x24] sm:$0xf] (%p830_p3) }
 0x13f   : > { %656 = vst.msk [vmem:[%s877_s27 + $0xc] sm:$0xf] %vm361_vm2, %v375_v24  ;;  %v365_v25 = vpop.permute.xlu0 %364 }
 0x140   : > { %654 = vst.msk [vmem:[%s877_s27 + $0x4] sm:$0xf] %vm361_vm2, %v365_v25 }
 0x141   : > { %467 = vst [vmem:[%s431_s17 + $0x48] sm:$0xf] (%p830_p3), %v466_v41 }
 0x146   : > { %v380_v26 = vpop.permute.xlu1 %379  ;;  %v454_v35 = vld [vmem:[%s877_s27 + $0xc] sm:$0xf] (%p830_p3) }
 0x147   : > { %657 = vst.msk [vmem:[%s877_s27 + $0x10] sm:$0xf] %vm361_vm2, %v380_v26  ;;  %v370_v27 = vpop.permute.xlu0 %369  ;;  %v450_v33 = vld [vmem:[%s877_s27 + $0x4] sm:$0xf] (%p830_p3) }
 0x148   : > { %655 = vst.msk [vmem:[%s877_s27 + $0x8] sm:$0xf] %vm361_vm2, %v370_v27 }
 0x149   : > { %451 = vst [vmem:[%s431_s17 + $0x8] sm:$0xf] (%p830_p3), %v450_v33 }
 0x14a   : > { %455 = vst [vmem:[%s431_s17 + $0x18] sm:$0xf] (%p830_p3), %v454_v35 }
 0x14e   : > { %v400_v28 = vpop.permute.xlu1 %399  ;;  %v456_v36 = vld [vmem:[%s877_s27 + $0x10] sm:$0xf] (%p830_p3) }
 0x14f   : > { %661 = vst.msk [vmem:[%s877_s27 + $0x20] sm:$0xf] %vm361_vm2, %v400_v28  ;;  %v395_v29 = vpop.permute.xlu0 %394  ;;  %v452_v34 = vld [vmem:[%s877_s27 + $0x8] sm:$0xf] (%p830_p3) }
 0x150   : > { %660 = vst.msk [vmem:[%s877_s27 + $0x1c] sm:$0xf] %vm361_vm2, %v395_v29 }
 0x151   : > { %453 = vst [vmem:[%s431_s17 + $0x10] sm:$0xf] (%p830_p3), %v452_v34 }
 0x152   : > { %457 = vst [vmem:[%s431_s17 + $0x20] sm:$0xf] (%p830_p3), %v456_v36 }
 0x154   : > { %425 = sbr.rel (!%p830_p3) target bundleno = 353 (0x161), region = 44 }
 0x156   : > { %v415_v30 = vpop.permute.xlu1 %414  ;;  %v464_v40 = vld [vmem:[%s877_s27 + $0x20] sm:$0xf] (%p830_p3) }
 0x157   : > { %664 = vst.msk [vmem:[%s877_s27 + $0x2c] sm:$0xf] %vm361_vm2, %v415_v30  ;;  %v410_v31 = vpop.permute.xlu0 %409  ;;  %v462_v39 = vld [vmem:[%s877_s27 + $0x1c] sm:$0xf] (%p830_p3) }
 0x158   : > { %663 = vst.msk [vmem:[%s877_s27 + $0x28] sm:$0xf] %vm361_vm2, %v410_v31 }
 0x159   : > { %463 = vst [vmem:[%s431_s17 + $0x38] sm:$0xf] %v462_v39 }
 0x15a   : > { %465 = vst [vmem:[%s431_s17 + $0x40] sm:$0xf] %v464_v40 }
 0x15e   : > { %v470_v43 = vld [vmem:[%s877_s27 + $0x2c] sm:$0xf] }
 0x15f   : > { %v468_v42 = vld [vmem:[%s877_s27 + $0x28] sm:$0xf]  ;;  %471 = vst [vmem:[%s431_s17 + $0x58] sm:$0xf] %v470_v43 }
 0x160   : > { %469 = vst [vmem:[%s431_s17 + $0x50] sm:$0xf] %v468_v42 }
 0x161 PF: > { %s13_s16 = sadd.s32 1, %s765_s16   ;;  %s941_s12 = smov %s753_s13 }
 0x162   : > { %p10_p9 = scmp.ge.s32.totalorder %s13_s16, 4   ;;  %s942_s13 = smov %s839_s22 }
 0x163   : > { %s943_s14 = smov %s761_s15  ;;  %s944_s15 = smov %s946_s18 }
 0x164   :  { %12 = sbr.rel (!%p10_p9) target bundleno = 3 (0x3), region = 128 }

</bundles_post_ra>
